<compile_context>
chip_gen: v7x
topology: tpu7x:2x2x1
jax: 0.10.0
libtpu: 0.0.40
codegen_flags: <defaults>
</compile_context>

<pallas_src>
import jax
import jax.numpy as jnp
from jax.experimental import pallas as pl
from jax.experimental.pallas import tpu as pltpu


def bow_kernel(data_ref, length_ref, m_ref, b1_ref, w2_ref, b2_ref, out_ref):
    TB, L = data_ref.shape
    V = m_ref.shape[0]
    L_CHUNK = 8 if L % 8 == 0 else L  # static chunking of the L reduction

    # Lane-only iota; the broadcast happens inside the compare (no 3-D iota).
    iota_v = jax.lax.broadcasted_iota(jnp.int32, (1, 1, V), 2)

    data = data_ref[...]                                   # (TB, L) int32

    # Token histogram: chunked over L to bound the (TB, L_CHUNK, V) mask live
    # set; single fused bool->f32 reduce per chunk (no int32 pass, no 2nd cast).
    counts = jnp.zeros((TB, V), jnp.float32)
    for c0 in range(0, L, L_CHUNK):                        # static, fully visible
        chunk = data[:, c0:c0 + L_CHUNK]                   # (TB, Lc) static slice
        mask = chunk[:, :, None] == iota_v                 # (TB, Lc, V) bool
        counts = counts + jnp.sum(mask, axis=1, dtype=jnp.float32)

    # counts <= L are exactly representable in bf16 -> native-rate MXU path.
    counts_bf = counts.astype(jnp.bfloat16)                # (TB, V) bf16

    # Bag-of-words sum through the folded bf16 table M = embed @ W1 -> (TB, H),
    # f32 accumulation on the MXU.
    summed = jnp.dot(counts_bf, m_ref[...], preferred_element_type=jnp.float32)

    # Mean over the true sentence length: exact reciprocal + one VPU multiply.
    inv_len = 1.0 / length_ref[...].astype(jnp.float32)    # (TB, 1)
    h = jnp.maximum(summed * inv_len + b1_ref[...], 0.0)   # (TB, H) relu

    # Lane-dense (H -> 128-padded) output head; unmasked store.
    # NOTE: if output HBM traffic ever shows in a trace, replace with two VPU
    # dot-products; at this size the padded MXU pass is free.
    out_ref[...] = (jnp.dot(h, w2_ref[...], preferred_element_type=jnp.float32)
                    + b2_ref[...])                         # (TB, 128)


def _pick_batch_tile(B):
    """Full batch in one grid step on single-TC chips; 2 parallel steps on v7x."""
    try:
        kind = jax.devices()[0].device_kind.lower()
    except Exception:
        kind = ""
    two_tc = "v7" in kind
    if two_tc and B >= 16 and (B // 2) % 8 == 0:
        return B // 2          # one tile per TensorCore (dimension_semantics parallel)
    return B                   # v5e/v6e: single grid step, full M dim to the MXU


def bag_of_words_forward(data, length, embed, w1, b1, w2, b2, *, batch_tile=None):
    B, L = data.shape
    V, E = embed.shape
    H = w1.shape[1]
    if batch_tile is None:
        batch_tile = _pick_batch_tile(B)
    assert B % batch_tile == 0, "batch must be a multiple of the batch tile"

    # Fold linear1 into the embedding table (valid: mean is linear, ReLU after).
    # Padding semantics: nn.Embedding(padding_idx=0) keeps embed[0] == 0, so
    # m[0] == 0 automatically — no override needed (kernel matches reference
    # for ANY embed).  Cast to bf16 for the native MXU path / half the VMEM.
    m = (embed.astype(jnp.float32) @ w1.astype(jnp.float32)).astype(jnp.bfloat16)

    # Pad the 2-class head to 128 output lanes (zero columns) for a dense store.
    OUT_PAD = 128
    w2p = jnp.zeros((H, OUT_PAD), jnp.float32).at[:, :2].set(w2)
    b2p = jnp.zeros((1, OUT_PAD), jnp.float32).at[:, :2].set(b2)

    # Guard against empty bags (reference would divide by zero).
    length = jnp.maximum(length, 1).astype(jnp.int32)

    grid = (B // batch_tile,)
    out_padded = pl.pallas_call(
        bow_kernel,
        out_shape=jax.ShapeDtypeStruct((B, OUT_PAD), jnp.float32),
        grid_spec=pltpu.PrefetchScalarGridSpec(
            num_scalar_prefetch=0,
            grid=grid,
            in_specs=[
                pl.BlockSpec((batch_tile, L), lambda i: (i, 0)),   # data tile
                pl.BlockSpec((batch_tile, 1), lambda i: (i, 0)),   # length tile
                pl.BlockSpec((V, H), lambda i: (0, 0)),            # folded bf16 table (resident)
                pl.BlockSpec((1, H), lambda i: (0, 0)),            # b1 (resident)
                pl.BlockSpec((H, OUT_PAD), lambda i: (0, 0)),      # padded W2 (resident)
                pl.BlockSpec((1, OUT_PAD), lambda i: (0, 0)),      # padded b2 (resident)
            ],
            out_specs=pl.BlockSpec((batch_tile, OUT_PAD), lambda i: (i, 0)),
        ),
        compiler_params=pltpu.CompilerParams(
            dimension_semantics=("parallel",)),
    )(data, length, m, b1, w2p, b2p)
    return out_padded[:, :2]


def reference_forward(data, length, embed, w1, b1, w2, b2):
    out = embed[data]                                   # (B, L, E)
    out = jnp.sum(out, axis=1)                          # (B, E)
    out = out / length.astype(jnp.float32)              # (B, E) ; length (B, 1)
    out = jax.nn.relu(out @ w1 + b1)
    return out @ w2 + b2


if __name__ == "__main__":
    # Small, forward-consistent shapes.
    B, L = 16, 16           # batch, max_sentence_length
    V, E, H = 128, 32, 32   # vocab_size, emb_dim, hidden_size

    key = jax.random.PRNGKey(0)
    k_emb, k_w1, k_b1, k_w2, k_b2, k_data, k_len = jax.random.split(key, 7)

    # Deterministic parameter init.  Row 0 is zeroed exactly as
    # nn.Embedding(padding_idx=0) does — both kernel and reference rely on this
    # for padding-token semantics.
    embed = jax.random.normal(k_emb, (V, E), jnp.float32) * 0.1
    embed = embed.at[0].set(0.0)
    w1 = jax.random.normal(k_w1, (E, H), jnp.float32) * (1.0 / jnp.sqrt(E))
    b1 = jax.random.normal(k_b1, (1, H), jnp.float32) * 0.01
    w2 = jax.random.normal(k_w2, (H, 2), jnp.float32) * (1.0 / jnp.sqrt(H))
    b2 = jax.random.normal(k_b2, (1, 2), jnp.float32) * 0.01

    # Synthetic padded sentences: random lengths, tokens in [1, V), 0-padded.
    length = jax.random.randint(k_len, (B, 1), 1, L + 1, jnp.int32)
    data = jax.random.randint(k_data, (B, L), 1, V, jnp.int32)
    pos = jnp.arange(L, dtype=jnp.int32)[None, :]
    data = jnp.where(pos < length, data, 0).astype(jnp.int32)

    out = bag_of_words_forward(data, length, embed, w1, b1, w2, b2)
    out = jax.block_until_ready(out)

    ref = reference_forward(data, length, embed, w1, b1, w2, b2)
    assert out.shape == (B, 2)
    # Tolerance accounts for the bf16-rounded folded table (f32 accumulation);
    # the length reciprocal is exact.
    assert jnp.allclose(out, ref, atol=5e-3, rtol=5e-3)

    print("KERNEL_OK")
</pallas_src>

<mosaic_0001>
module attributes {stable_mosaic.version = 11 : i64} {
  func.func @bow_kernel(%arg0: i32, %arg1: memref<16x16xi32, #tpu.memory_space<vmem>>, %arg2: memref<16x1xi32, #tpu.memory_space<vmem>>, %arg3: memref<128x32xbf16, #tpu.memory_space<vmem>>, %arg4: memref<1x32xf32, #tpu.memory_space<vmem>>, %arg5: memref<32x128xf32, #tpu.memory_space<vmem>>, %arg6: memref<1x128xf32, #tpu.memory_space<vmem>>, %arg7: memref<16x128xf32, #tpu.memory_space<vmem>>) attributes {dimension_semantics = [#tpu.dimension_semantics<parallel>], iteration_bounds = array<i64: 1>, scalar_prefetch = 0 : i64, scratch_operands = 0 : i64, tpu.core_type = #tpu.core_type<tc>, window_params = [{transform_indices = @transform_0, window_bounds = array<i64: 16, 16>}, {transform_indices = @transform_1, window_bounds = array<i64: 16, 1>}, {pipeline_mode = #tpu.pipeline_mode<synchronous>, transform_indices = @transform_2, window_bounds = array<i64: 128, 32>}, {pipeline_mode = #tpu.pipeline_mode<synchronous>, transform_indices = @transform_3, window_bounds = array<i64: 1, 32>}, {pipeline_mode = #tpu.pipeline_mode<synchronous>, transform_indices = @transform_4, window_bounds = array<i64: 32, 128>}, {pipeline_mode = #tpu.pipeline_mode<synchronous>, transform_indices = @transform_5, window_bounds = array<i64: 1, 128>}, {transform_indices = @transform_6, window_bounds = array<i64: 16, 128>}]} {
    %0 = tpu.iota {dimensions = array<i32: 2>} : vector<1x1x128xi32>
    %c0 = arith.constant 0 : index
    %c0_0 = arith.constant 0 : index
    %1 = vector.load %arg1[%c0, %c0_0] : memref<16x16xi32, #tpu.memory_space<vmem>>, vector<16x16xi32>
    %cst = arith.constant 0.000000e+00 : f32
    %2 = vector.broadcast %cst : f32 to vector<16x128xf32>
    %3 = vector.extract_strided_slice %1 {offsets = [0, 0], sizes = [16, 8], strides = [1, 1]} : vector<16x16xi32> to vector<16x8xi32>
    %4 = vector.shape_cast %3 : vector<16x8xi32> to vector<16x8x1xi32>
    %5 = vector.broadcast %4 : vector<16x8x1xi32> to vector<16x8x128xi32>
    %6 = vector.broadcast %0 : vector<1x1x128xi32> to vector<16x8x128xi32>
    %7 = arith.cmpi eq, %5, %6 : vector<16x8x128xi32>
    %8 = arith.extui %7 : vector<16x8x128xi1> to vector<16x8x128xi32>
    %9 = arith.sitofp %8 : vector<16x8x128xi32> to vector<16x8x128xf32>
    %cst_1 = arith.constant dense<0.000000e+00> : vector<16x128xf32>
    %10 = vector.multi_reduction <add>, %9, %cst_1 [1] : vector<16x8x128xf32> to vector<16x128xf32>
    %11 = arith.addf %2, %10 : vector<16x128xf32>
    %12 = vector.extract_strided_slice %1 {offsets = [0, 8], sizes = [16, 8], strides = [1, 1]} : vector<16x16xi32> to vector<16x8xi32>
    %13 = vector.shape_cast %12 : vector<16x8xi32> to vector<16x8x1xi32>
    %14 = vector.broadcast %13 : vector<16x8x1xi32> to vector<16x8x128xi32>
    %15 = vector.broadcast %0 : vector<1x1x128xi32> to vector<16x8x128xi32>
    %16 = arith.cmpi eq, %14, %15 : vector<16x8x128xi32>
    %17 = arith.extui %16 : vector<16x8x128xi1> to vector<16x8x128xi32>
    %18 = arith.sitofp %17 : vector<16x8x128xi32> to vector<16x8x128xf32>
    %cst_2 = arith.constant dense<0.000000e+00> : vector<16x128xf32>
    %19 = vector.multi_reduction <add>, %18, %cst_2 [1] : vector<16x8x128xf32> to vector<16x128xf32>
    %20 = arith.addf %11, %19 : vector<16x128xf32>
    %21 = arith.truncf %20 : vector<16x128xf32> to vector<16x128xbf16>
    %c0_3 = arith.constant 0 : index
    %c0_4 = arith.constant 0 : index
    %22 = vector.load %arg3[%c0_3, %c0_4] : memref<128x32xbf16, #tpu.memory_space<vmem>>, vector<128x32xbf16>
    %cst_5 = arith.constant dense<0.000000e+00> : vector<16x32xf32>
    %23 = tpu.matmul %21, %22, %cst_5 {dimension_numbers = #tpu.dot_dimension_numbers<[1], [0], [0], [1], [0, 0, 1, 1], [], []>} : vector<16x128xbf16>, vector<128x32xbf16>, vector<16x32xf32> -> vector<16x32xf32>
    %c0_6 = arith.constant 0 : index
    %c0_7 = arith.constant 0 : index
    %24 = vector.load %arg2[%c0_6, %c0_7] : memref<16x1xi32, #tpu.memory_space<vmem>>, vector<16x1xi32>
    %25 = arith.sitofp %24 : vector<16x1xi32> to vector<16x1xf32>
    %cst_8 = arith.constant 1.000000e+00 : f32
    %26 = vector.broadcast %cst_8 : f32 to vector<16x1xf32>
    %27 = arith.divf %26, %25 : vector<16x1xf32>
    %28 = vector.broadcast %27 : vector<16x1xf32> to vector<16x32xf32>
    %29 = arith.mulf %23, %28 : vector<16x32xf32>
    %c0_9 = arith.constant 0 : index
    %c0_10 = arith.constant 0 : index
    %30 = vector.load %arg4[%c0_9, %c0_10] : memref<1x32xf32, #tpu.memory_space<vmem>>, vector<1x32xf32>
    %31 = vector.broadcast %30 : vector<1x32xf32> to vector<16x32xf32>
    %32 = arith.addf %29, %31 : vector<16x32xf32>
    %cst_11 = arith.constant 0.000000e+00 : f32
    %33 = vector.broadcast %cst_11 : f32 to vector<16x32xf32>
    %34 = arith.maximumf %32, %33 : vector<16x32xf32>
    %c0_12 = arith.constant 0 : index
    %c0_13 = arith.constant 0 : index
    %35 = vector.load %arg5[%c0_12, %c0_13] : memref<32x128xf32, #tpu.memory_space<vmem>>, vector<32x128xf32>
    %cst_14 = arith.constant dense<0.000000e+00> : vector<16x128xf32>
    %36 = tpu.matmul %34, %35, %cst_14 {dimension_numbers = #tpu.dot_dimension_numbers<[1], [0], [0], [1], [0, 0, 1, 1], [], []>} : vector<16x32xf32>, vector<32x128xf32>, vector<16x128xf32> -> vector<16x128xf32>
    %c0_15 = arith.constant 0 : index
    %c0_16 = arith.constant 0 : index
    %37 = vector.load %arg6[%c0_15, %c0_16] : memref<1x128xf32, #tpu.memory_space<vmem>>, vector<1x128xf32>
    %38 = vector.broadcast %37 : vector<1x128xf32> to vector<16x128xf32>
    %39 = arith.addf %36, %38 : vector<16x128xf32>
    %c0_17 = arith.constant 0 : index
    %c0_18 = arith.constant 0 : index
    %40 = vector.load %arg7[%c0_17, %c0_18] : memref<16x128xf32, #tpu.memory_space<vmem>>, vector<16x128xf32>
    tpu.vector_store %arg7[%c0_17, %c0_18], %39 {strides = array<i32>} : memref<16x128xf32, #tpu.memory_space<vmem>>, vector<16x128xf32>,
    return
  }
  func.func @transform_0(%arg0: i32) -> (i32, i32) {
    %c0_i32 = arith.constant 0 : i32
    %c0_i32_0 = arith.constant 0 : i32
    return %arg0, %c0_i32 : i32, i32
  }
  func.func @transform_1(%arg0: i32) -> (i32, i32) {
    %c0_i32 = arith.constant 0 : i32
    %c0_i32_0 = arith.constant 0 : i32
    return %arg0, %c0_i32 : i32, i32
  }
  func.func @transform_2(%arg0: i32) -> (i32, i32) {
    %c0_i32 = arith.constant 0 : i32
    %c0_i32_0 = arith.constant 0 : i32
    %c0_i32_1 = arith.constant 0 : i32
    return %c0_i32, %c0_i32_0 : i32, i32
  }
  func.func @transform_3(%arg0: i32) -> (i32, i32) {
    %c0_i32 = arith.constant 0 : i32
    %c0_i32_0 = arith.constant 0 : i32
    %c0_i32_1 = arith.constant 0 : i32
    return %c0_i32, %c0_i32_0 : i32, i32
  }
  func.func @transform_4(%arg0: i32) -> (i32, i32) {
    %c0_i32 = arith.constant 0 : i32
    %c0_i32_0 = arith.constant 0 : i32
    %c0_i32_1 = arith.constant 0 : i32
    return %c0_i32, %c0_i32_0 : i32, i32
  }
  func.func @transform_5(%arg0: i32) -> (i32, i32) {
    %c0_i32 = arith.constant 0 : i32
    %c0_i32_0 = arith.constant 0 : i32
    %c0_i32_1 = arith.constant 0 : i32
    return %c0_i32, %c0_i32_0 : i32, i32
  }
  func.func @transform_6(%arg0: i32) -> (i32, i32) {
    %c0_i32 = arith.constant 0 : i32
    %c0_i32_0 = arith.constant 0 : i32
    return %arg0, %c0_i32 : i32, i32
  }
}

</mosaic_0001>

<bundles_post_ra>
// kernel: tpu_custom_call.1
= control target key start
LH: loop header
LB: loop body
LE: loop exit
PB: predicated region body
PF: predicated region fallthrough
CT: control target
= control target key end

     0   :  { %v25_v0 = vlaneseq  ;;  %v985_v2 = vmov 0.0   ;;  %s1213_s0 = inlined_call_operand.vmem [shape: s32[16,16], index: 0, kind: input, shape index: {}]   ;;  %s1214_s1 = inlined_call_operand.vmem [shape: s32[16,1], index: 1, kind: input, shape index: {}]   ;;  %s1215_s2 = inlined_call_operand.vmem [shape: bf16[128,32], index: 2, kind: input, shape index: {}]   ;;  %s1216_s3 = inlined_call_operand.vmem [shape: f32[1,32], index: 3, kind: input, shape index: {}]   ;;  %s1217_s4 = inlined_call_operand.vmem [shape: f32[32,128], index: 4, kind: input, shape index: {}]   ;;  %s1218_s5 = inlined_call_operand.vmem [shape: f32[1,128], index: 5, kind: input, shape index: {}]   ;;  %s1219_s6 = inlined_call_operand.hbm [shape: f32[16,128], index: 6, kind: output, shape index: {}]  }
   0x1   :  { %v28_v1 = vld [vmem:[%s1213_s0 + $0x8] sm:$0xff]  ;;  %902 = vmatprep.subr.bf16.mxu0 %v985_v2  ;;  %v27_v4 = vld [vmem:[%s1213_s0] sm:$0xff] }
   0x2   :  { %v30_v3 = vshrl.u32 %v25_v0, 7 }
   0x4   :  { %v31_v5 = vsub.s32 0, %v30_v3  ;;  %v38_v6 = vsub.s32 1, %v30_v3 }
   0x6   :  { %v88_v7 = vrot.slane %v28_v1, %v31_v5  ;;  %v32_v8 = vrot.slane %v27_v4, %v31_v5 }
   0x7   :  { %11 = vsyncpa [#allocation3], 0  ;;  %v95_v9 = vrot.slane %v28_v1, %v38_v6  ;;  %v39_v10 = vrot.slane %v27_v4, %v38_v6  ;;  %v45_v11 = vsub.s32 2, %v30_v3  ;;  %v52_v14 = vsub.s32 3, %v30_v3  ;;  %v949_v27 = vld [vmem:[%s1215_s2] sm:$0xff]   ;;  %v950_v30 = vld [vmem:[%s1215_s2 + $0x8] sm:$0xff]  }
   0x8   :  { %90 = vbcast.lane.b32.xlu1 %v88_v7, 256  ;;  %34 = vbcast.lane.b32.xlu0 %v32_v8, 256  ;;  %v59_v17 = vsub.s32 4, %v30_v3  ;;  %v66_v20 = vsub.s32 5, %v30_v3  ;;  %v73_v23 = vsub.s32 6, %v30_v3  ;;  %v80_v26 = vsub.s32 7, %v30_v3 }
   0x9   :  { %v102_v12 = vrot.slane %v28_v1, %v45_v11  ;;  %v46_v13 = vrot.slane %v27_v4, %v45_v11  ;;  %v109_v15 = vrot.slane %v28_v1, %v52_v14  ;;  %v53_v16 = vrot.slane %v27_v4, %v52_v14  ;;  %903 = vmatpush3.bf16.msra.mxu0 %v949_v27  ;;  %v951_v31 = vld [vmem:[%s1215_s2 + $0x10] sm:$0xff]   ;;  %v952_v32 = vld [vmem:[%s1215_s2 + $0x18] sm:$0xff]   ;;  %v953_v33 = vld [vmem:[%s1215_s2 + $0x20] sm:$0xff]   ;;  %s988_s28 = smov [#allocation2]  }
   0xa   :  { %v116_v18 = vrot.slane %v28_v1, %v59_v17  ;;  %v60_v19 = vrot.slane %v27_v4, %v59_v17  ;;  %v123_v21 = vrot.slane %v28_v1, %v66_v20  ;;  %v67_v22 = vrot.slane %v27_v4, %v66_v20  ;;  %904 = vmatprep.subr.bf16.mxu0 %v985_v2  ;;  %v954_v34 = vld [vmem:[%s1215_s2 + $0x28] sm:$0xff]   ;;  %v955_v35 = vld [vmem:[%s1215_s2 + $0x30] sm:$0xff]   ;;  %v956_v36 = vld [vmem:[%s1215_s2 + $0x38] sm:$0xff]   ;;  %s832_s29 = sshll.u32 %s988_s28, 4  ;;  %s833_s29 = int_to_ptr.vmem [resolvable:$true] %s832_s29 }
   0xb   :  { %v130_v24 = vrot.slane %v28_v1, %v73_v23  ;;  %v74_v25 = vrot.slane %v27_v4, %v73_v23  ;;  %v137_v28 = vrot.slane %v28_v1, %v80_v26  ;;  %v81_v29 = vrot.slane %v27_v4, %v80_v26  ;;  %v701_v37 = vld [vmem:[%s1214_s1] sm:$0xff]  ;;  %v702_v38 = vld [vmem:[%s1214_s1 + $0x8] sm:$0xff]  ;;  %p966_p1 = scmp.lt.s32.totalorder %s833_s29, %s833_s29 }
   0xc   :  { %97 = vbcast.lane.b32.xlu1 %v95_v9, 256  ;;  %41 = vbcast.lane.b32.xlu0 %v39_v10, 256  ;;  %vm986_vm0 = vmmov 0   ;;  %v987_v39 = vmov 0   ;;  %v703_v40 = vcvt.s32.f32 %v701_v37  ;;  %v704_v41 = vcvt.s32.f32 %v702_v38 }
   0xd   :  { %905 = vmatpush3.bf16.msra.mxu0 %v950_v30  ;;  %918 = vmatprep.mubr.msk.bf16.mxu0 %vm986_vm0, %v985_v2  ;;  %v1073_v46 = vand.u32 127, %v25_v0 }
   0xe   :  { %906 = vmatprep.subr.bf16.mxu0 %v985_v2  ;;  %947 = vset.pattern.permute.xlu0 %v987_v39  ;;  %957 = vrcp.f32 %v703_v40 }
   0xf   :  { %948 = vset.pattern.permute.xlu1 %v987_v39  ;;  %959 = vrcp.f32 %v704_v41 }
  0x10   :  { %307 = vbcast.lane.b32.xlu1 %v39_v10, 264  ;;  %303 = vbcast.lane.b32.xlu0 %v32_v8, 264 }
  0x11   :  { %907 = vmatpush3.bf16.msra.mxu0 %v951_v31 }
  0x12   :  { %908 = vmatprep.subr.bf16.mxu0 %v985_v2 }
  0x14   :  { %339 = vbcast.lane.b32.xlu1 %v95_v9, 264  ;;  %335 = vbcast.lane.b32.xlu0 %v88_v7, 264 }
  0x15   :  { %909 = vmatpush3.bf16.msra.mxu0 %v952_v32 }
  0x16   :  { %910 = vmatprep.subr.bf16.mxu0 %v985_v2 }
  0x18   :  { %104 = vbcast.lane.b32.xlu1 %v102_v12, 256  ;;  %48 = vbcast.lane.b32.xlu0 %v46_v13, 256  ;;  %v958_v42 = vpop.eup %957 }
  0x19   :  { %911 = vmatpush3.bf16.msra.mxu0 %v953_v33  ;;  %v960_v43 = vpop.eup %959 }
  0x1a   :  { %912 = vmatprep.subr.bf16.mxu0 %v985_v2 }
  0x1c   :  { %343 = vbcast.lane.b32.xlu1 %v102_v12, 264  ;;  %311 = vbcast.lane.b32.xlu0 %v46_v13, 264 }
  0x1d   :  { %913 = vmatpush3.bf16.msra.mxu0 %v954_v34 }
  0x1e   :  { %914 = vmatprep.subr.bf16.mxu0 %v985_v2 }
  0x20   :  { %111 = vbcast.lane.b32.xlu1 %v109_v15, 256  ;;  %55 = vbcast.lane.b32.xlu0 %v53_v16, 256 }
  0x21   :  { %915 = vmatpush3.bf16.msra.mxu0 %v955_v35 }
  0x22   :  { %916 = vmatprep.subr.bf16.mxu0 %v985_v2 }
  0x24   :  { %347 = vbcast.lane.b32.xlu1 %v109_v15, 264  ;;  %315 = vbcast.lane.b32.xlu0 %v53_v16, 264 }
  0x25   :  { %917 = vmatpush3.bf16.msra.mxu0 %v956_v36 }
  0x28   :  { %118 = vbcast.lane.b32.xlu1 %v116_v18, 256  ;;  %62 = vbcast.lane.b32.xlu0 %v60_v19, 256 }
  0x2c   :  { %351 = vbcast.lane.b32.xlu1 %v116_v18, 264  ;;  %319 = vbcast.lane.b32.xlu0 %v60_v19, 264 }
  0x30   :  { %125 = vbcast.lane.b32.xlu1 %v123_v21, 256  ;;  %69 = vbcast.lane.b32.xlu0 %v67_v22, 256 }
  0x34   :  { %355 = vbcast.lane.b32.xlu1 %v123_v21, 264  ;;  %323 = vbcast.lane.b32.xlu0 %v67_v22, 264 }
  0x38   :  { %132 = vbcast.lane.b32.xlu1 %v130_v24, 256  ;;  %76 = vbcast.lane.b32.xlu0 %v74_v25, 256 }
  0x3c   :  { %359 = vbcast.lane.b32.xlu1 %v130_v24, 264  ;;  %327 = vbcast.lane.b32.xlu0 %v74_v25, 264 }
  0x40   :  { %139 = vbcast.lane.b32.xlu1 %v137_v28, 256  ;;  %83 = vbcast.lane.b32.xlu0 %v81_v29, 256 }
  0x44   :  { %363 = vbcast.lane.b32.xlu1 %v137_v28, 264  ;;  %331 = vbcast.lane.b32.xlu0 %v81_v29, 264 }
  0x48   :  { %711 = vperm.xlu0 %947, %v958_v42   ;;  %716 = vperm.xlu1 %948, %v960_v43  }
  0x7a   :  { %v91_v44 = vpop.permute.xlu1 %90  ;;  %v35_v45 = vpop.permute.xlu0 %34 }
  0x7b   :  { %vm149_vm1 = vcmp.eq.s32.totalorder %v91_v44, %v1073_v46  ;;  %vm141_vm2 = vcmp.eq.s32.totalorder %v35_v45, %v1073_v46 }
  0x7c   :  { %v851_v50 = vsel %vm149_vm1, 1.0, %v985_v2  ;;  %v843_v51 = vsel %vm141_vm2, 1.0, %v985_v2 }
  0x7d   :  { %v237_v56 = vrot.slane %v851_v50, 4  ;;  %v189_v57 = vrot.slane %v843_v51, 4 }
  0x7e   :  { %v98_v47 = vpop.permute.xlu1 %97  ;;  %v42_v48 = vpop.permute.xlu0 %41 }
  0x7f   :  { %vm142_vm3 = vcmp.eq.s32.totalorder %v42_v48, %v1073_v46  ;;  %vm150_vm4 = vcmp.eq.s32.totalorder %v98_v47, %v1073_v46  ;;  %v238_v3 = vadd.f32 %v851_v50, %v237_v56  ;;  %v190_v4 = vadd.f32 %v843_v51, %v189_v57 }
  0x80   :  { %v844_v49 = vsel %vm142_vm3, 1.0, %v985_v2  ;;  %v852_v55 = vsel %vm150_vm4, 1.0, %v985_v2  ;;  %vm589_vm3 = vcmask 1041409  }
  0x81   :  { %v195_v54 = vrot.slane %v844_v49, 4  ;;  %v243_v62 = vrot.slane %v852_v55, 4  ;;  %v191_v19 = vrot.slane %v190_v4, 2  ;;  %v239_v20 = vrot.slane %v238_v3, 2 }
  0x82   :  { %v308_v52 = vpop.permute.xlu1 %307  ;;  %v304_v53 = vpop.permute.xlu0 %303 }
  0x83   :  { %vm366_vm5 = vcmp.eq.s32.totalorder %v308_v52, %v1073_v46  ;;  %vm365_vm6 = vcmp.eq.s32.totalorder %v304_v53, %v1073_v46  ;;  %v196_v63 = vadd.f32 %v844_v49, %v195_v54  ;;  %v244_v13 = vadd.f32 %v852_v55, %v243_v62 }
  0x84   :  { %v860_v58 = vsel %vm366_vm5, 1.0, %v985_v2  ;;  %v859_v59 = vsel %vm365_vm6, 1.0, %v985_v2  ;;  %v192_v31 = vadd.f32 %v191_v19, %v190_v4  ;;  %v240_v34 = vadd.f32 %v239_v20, %v238_v3 }
  0x85   :  { %v419_v0 = vrot.slane %v860_v58, 4  ;;  %v413_v1 = vrot.slane %v859_v59, 4  ;;  %v197_v14 = vrot.slane %v196_v63, 2  ;;  %v245_v26 = vrot.slane %v244_v13, 2 }
  0x86   :  { %v340_v60 = vpop.permute.xlu1 %339  ;;  %v336_v61 = vpop.permute.xlu0 %335  ;;  %v193_v45 = vrot.slane %v192_v31, 1  ;;  %v241_v54 = vrot.slane %v240_v34, 1 }
  0x87   :  { %vm374_vm7 = vcmp.eq.s32.totalorder %v340_v60, %v1073_v46  ;;  %vm373_vm8 = vcmp.eq.s32.totalorder %v336_v61, %v1073_v46  ;;  %v420_v7 = vadd.f32 %v860_v58, %v419_v0  ;;  %v414_v8 = vadd.f32 %v859_v59, %v413_v1 }
  0x88   :  { %v868_v5 = vsel %vm374_vm7, 1.0, %v985_v2  ;;  %v867_v6 = vsel %vm373_vm8, 1.0, %v985_v2  ;;  %v198_v29 = vadd.f32 %v197_v14, %v196_v63  ;;  %v246_v39 = vadd.f32 %v245_v26, %v244_v13 }
  0x89   :  { %v467_v9 = vrot.slane %v868_v5, 4  ;;  %v461_v10 = vrot.slane %v867_v6, 4  ;;  %v421_v15 = vrot.slane %v420_v7, 2  ;;  %v415_v16 = vrot.slane %v414_v8, 2 }
  0x8a   :  { %v105_v11 = vpop.permute.xlu1 %104  ;;  %v49_v12 = vpop.permute.xlu0 %48  ;;  %v199_v43 = vrot.slane %v198_v29, 1  ;;  %v247_v55 = vrot.slane %v246_v39, 1  ;;  %v194_v60 = vadd.f32 %v193_v45, %v192_v31 }
  0x8b   :  { %vm151_vm9 = vcmp.eq.s32.totalorder %v105_v11, %v1073_v46  ;;  %vm143_vm10 = vcmp.eq.s32.totalorder %v49_v12, %v1073_v46  ;;  %v468_v17 = vadd.f32 %v868_v5, %v467_v9  ;;  %v462_v18 = vadd.f32 %v867_v6, %v461_v10 }
  0x8c   :  { %v422_v21 = vadd.f32 %v421_v15, %v420_v7  ;;  %v853_v22 = vsel %vm151_vm9, 1.0, %v985_v2  ;;  %v845_v23 = vsel %vm143_vm10, 1.0, %v985_v2  ;;  %v416_v27 = vadd.f32 %v415_v16, %v414_v8 }
  0x8d   :  { %v469_v28 = vrot.slane %v468_v17, 2  ;;  %v463_v30 = vrot.slane %v462_v18, 2  ;;  %v249_v32 = vrot.slane %v853_v22, 4  ;;  %v201_v33 = vrot.slane %v845_v23, 4 }
  0x8e   :  { %v344_v24 = vpop.permute.xlu1 %343  ;;  %v312_v25 = vpop.permute.xlu0 %311  ;;  %v423_v35 = vrot.slane %v422_v21, 1  ;;  %v417_v40 = vrot.slane %v416_v27, 1  ;;  %v200_v58 = vadd.f32 %v199_v43, %v198_v29  ;;  %v242_v5 = vadd.f32 %v241_v54, %v240_v34 }
  0x8f   :  { %vm375_vm11 = vcmp.eq.s32.totalorder %v344_v24, %v1073_v46  ;;  %vm367_vm12 = vcmp.eq.s32.totalorder %v312_v25, %v1073_v46  ;;  %v470_v41 = vadd.f32 %v469_v28, %v468_v17  ;;  %v464_v44 = vadd.f32 %v463_v30, %v462_v18 }
  0x90   :  { %v869_v36 = vsel %vm375_vm11, 1.0, %v985_v2  ;;  %v861_v42 = vsel %vm367_vm12, 1.0, %v985_v2  ;;  %v250_v47 = vadd.f32 %v853_v22, %v249_v32  ;;  %v202_v48 = vadd.f32 %v845_v23, %v201_v33 }
  0x91   :  { %v473_v49 = vrot.slane %v869_v36, 4  ;;  %v424_v50 = vadd.f32 %v423_v35, %v422_v21  ;;  %v425_v51 = vrot.slane %v861_v42, 4  ;;  %v418_v56 = vadd.f32 %v417_v40, %v416_v27 }
  0x92   :  { %v112_v37 = vpop.permute.xlu1 %111  ;;  %v56_v38 = vpop.permute.xlu0 %55  ;;  %v471_v57 = vrot.slane %v470_v41, 1  ;;  %v465_v59 = vrot.slane %v464_v44, 1  ;;  %v251_v61 = vrot.slane %v250_v47, 2  ;;  %v203_v62 = vrot.slane %v202_v48, 2 }
  0x93   :  { %v474_v63 = vadd.f32 %v869_v36, %v473_v49  ;;  %v510_v0 = vadd.f32 %v424_v50, %v200_v58  ;;  %v426_v1 = vadd.f32 %v861_v42, %v425_v51  ;;  %vm152_vm13 = vcmp.eq.s32.totalorder %v112_v37, %v1073_v46 }
  0x94   :  { %v248_v6 = vadd.f32 %v247_v55, %v246_v39  ;;  %v509_v7 = vadd.f32 %v418_v56, %v194_v60  ;;  %v472_v8 = vadd.f32 %v471_v57, %v470_v41  ;;  %v466_v9 = vadd.f32 %v465_v59, %v464_v44 }
  0x95   :  { %v854_v10 = vsel %vm152_vm13, 1.0, %v985_v2  ;;  %vm144_vm14 = vcmp.eq.s32.totalorder %v56_v38, %v1073_v46  ;;  %v252_v11 = vadd.f32 %v251_v61, %v250_v47  ;;  %v204_v12 = vadd.f32 %v203_v62, %v202_v48 }
  0x96   :  { %v348_v52 = vpop.permute.xlu1 %347  ;;  %v316_v53 = vpop.permute.xlu0 %315  ;;  %v475_v13 = vrot.slane %v474_v63, 2  ;;  %v526_v15 = vpack.c.bf16 %v510_v0, %v510_v0  ;;  %v427_v16 = vrot.slane %v426_v1, 2  ;;  %v255_v19 = vrot.slane %v854_v10, 4 }
  0x97   :  { %vm376_vm15 = vcmp.eq.s32.totalorder %v348_v52, %v1073_v46  ;;  %vm368_vm0 = vcmp.eq.s32.totalorder %v316_v53, %v1073_v46  ;;  %v846_v20 = vsel %vm144_vm14, 1.0, %v985_v2  ;;  %v525_v23 = vpack.c.bf16 %v509_v7, %v509_v7 }
  0x98   :  { %v870_v14 = vsel %vm376_vm15, 1.0, %v985_v2  ;;  %v862_v22 = vsel %vm368_vm0, 1.0, %v985_v2  ;;  %v518_v24 = vadd.f32 %v472_v8, %v248_v6  ;;  %v517_v26 = vadd.f32 %v466_v9, %v242_v5 }
  0x99   :  { %v479_v21 = vrot.slane %v870_v14, 4  ;;  %v431_v25 = vrot.slane %v862_v22, 4  ;;  %v253_v27 = vrot.slane %v252_v11, 1  ;;  %v476_v28 = vadd.f32 %v475_v13, %v474_v63 }
  0x9a   :  { %v119_v3 = vpop.permute.xlu1 %118  ;;  %v63_v4 = vpop.permute.xlu0 %62  ;;  %v205_v30 = vrot.slane %v204_v12, 1  ;;  %v428_v31 = vadd.f32 %v427_v16, %v426_v1  ;;  %v207_v32 = vrot.slane %v846_v20, 4  ;;  %v574_v35 = vunpack.c.l.b16 %v526_v15 }
  0x9b   :  { %vm153_vm1 = vcmp.eq.s32.totalorder %v119_v3, %v1073_v46  ;;  %vm145_vm2 = vcmp.eq.s32.totalorder %v63_v4, %v1073_v46  ;;  %v256_v36 = vadd.f32 %v854_v10, %v255_v19  ;;  %v480_v37 = vadd.f32 %v870_v14, %v479_v21 }
  0x9c   :  { %v855_v29 = vsel %vm153_vm1, 1.0, %v985_v2  ;;  %v573_v38 = vunpack.c.l.b16 %v525_v23  ;;  %v432_v39 = vadd.f32 %v862_v22, %v431_v25  ;;  %v847_v41 = vsel %vm145_vm2, 1.0, %v985_v2 }
  0x9d   :  { %v261_v40 = vrot.slane %v855_v29, 4  ;;  %v534_v42 = vpack.c.bf16 %v518_v24, %v518_v24  ;;  %v533_v43 = vpack.c.bf16 %v517_v26, %v517_v26  ;;  %v254_v44 = vadd.f32 %v253_v27, %v252_v11 }
  0x9e   :  { %v352_v17 = vpop.permute.xlu1 %351  ;;  %v320_v18 = vpop.permute.xlu0 %319  ;;  %v477_v45 = vrot.slane %v476_v28, 1  ;;  %v206_v47 = vadd.f32 %v205_v30, %v204_v12  ;;  %v429_v48 = vrot.slane %v428_v31, 1  ;;  %v208_v49 = vadd.f32 %v846_v20, %v207_v32 }
  0x9f   :  { %v213_v50 = vrot.slane %v847_v41, 4  ;;  %v257_v52 = vrot.slane %v256_v36, 2  ;;  %v481_v53 = vrot.slane %v480_v37, 2  ;;  %vm377_vm4 = vcmp.eq.s32.totalorder %v352_v17, %v1073_v46 }
  0xa0   :  { %vm369_vm5 = vcmp.eq.s32.totalorder %v320_v18, %v1073_v46  ;;  %v433_v55 = vrot.slane %v432_v39, 2  ;;  %v262_v56 = vadd.f32 %v855_v29, %v261_v40  ;;  %v871_v58 = vsel %vm377_vm4, 1.0, %v985_v2 }
  0xa1   :  { %v214_v57 = vadd.f32 %v847_v41, %v213_v50  ;;  %v1115_v59 = vsel %vm589_vm3, %v574_v35, %v573_v38  ;;  %v478_v60 = vadd.f32 %v477_v45, %v476_v28  ;;  %v485_v61 = vrot.slane %v871_v58, 4 }
  0xa2   :  { %v126_v33 = vpop.permute.xlu1 %125  ;;  %v70_v34 = vpop.permute.xlu0 %69  ;;  %v863_v62 = vsel %vm369_vm5, 1.0, %v985_v2  ;;  %v430_v63 = vadd.f32 %v429_v48, %v428_v31  ;;  %v209_v0 = vrot.slane %v208_v49, 2  ;;  %v258_v3 = vadd.f32 %v257_v52, %v256_v36 }
  0xa3   :  { %v437_v1 = vrot.slane %v863_v62, 4  ;;  %vm154_vm6 = vcmp.eq.s32.totalorder %v126_v33, %v1073_v46  ;;  %v482_v4 = vadd.f32 %v481_v53, %v480_v37  ;;  %v486_v5 = vadd.f32 %v871_v58, %v485_v61 }
  0xa4   :  { %vm146_vm7 = vcmp.eq.s32.totalorder %v70_v34, %v1073_v46  ;;  %v1120_v6 = vunpack.c.l.b16 %v534_v42  ;;  %v434_v7 = vadd.f32 %v433_v55, %v432_v39  ;;  %v263_v8 = vrot.slane %v262_v56, 2 }
  0xa5   :  { %v215_v9 = vrot.slane %v214_v57, 2  ;;  %v438_v11 = vadd.f32 %v863_v62, %v437_v1  ;;  %v856_v12 = vsel %vm154_vm6, 1.0, %v985_v2  ;;  %v848_v13 = vsel %vm146_vm7, 1.0, %v985_v2 }
  0xa6   :  { %v356_v51 = vpop.permute.xlu1 %355  ;;  %v324_v54 = vpop.permute.xlu0 %323  ;;  %v1125_v15 = vunpack.c.l.b16 %v533_v43  ;;  %v1127_v16 = vadd.f32 %v478_v60, %v254_v44  ;;  %v210_v17 = vadd.f32 %v209_v0, %v208_v49  ;;  %v487_v18 = vrot.slane %v486_v5, 2 }
  0xa7   :  { %vm378_vm8 = vcmp.eq.s32.totalorder %v356_v51, %v1073_v46  ;;  %v1129_v19 = vadd.f32 %v430_v63, %v206_v47  ;;  %v259_v20 = vrot.slane %v258_v3, 1  ;;  %v483_v21 = vrot.slane %v482_v4, 1 }
  0xa8   :  { %v872_v22 = vsel %vm378_vm8, 1.0, %v985_v2  ;;  %v264_v23 = vadd.f32 %v263_v8, %v262_v56  ;;  %v267_v24 = vrot.slane %v856_v12, 4  ;;  %v219_v25 = vrot.slane %v848_v13, 4 }
  0xa9   :  { %v491_v26 = vrot.slane %v872_v22, 4  ;;  %v435_v27 = vrot.slane %v434_v7, 1  ;;  %v216_v28 = vadd.f32 %v215_v9, %v214_v57  ;;  %v439_v29 = vrot.slane %v438_v11, 2 }
  0xaa   :  { %v133_v10 = vpop.permute.xlu1 %132  ;;  %v77_v14 = vpop.permute.xlu0 %76  ;;  %vm370_vm9 = vcmp.eq.s32.totalorder %v324_v54, %v1073_v46  ;;  %v211_v30 = vrot.slane %v210_v17, 1  ;;  %v488_v31 = vadd.f32 %v487_v18, %v486_v5  ;;  %v260_v34 = vadd.f32 %v259_v20, %v258_v3 }
  0xab   :  { %v864_v32 = vsel %vm370_vm9, 1.0, %v985_v2  ;;  %vm155_vm10 = vcmp.eq.s32.totalorder %v133_v10, %v1073_v46  ;;  %v484_v35 = vadd.f32 %v483_v21, %v482_v4  ;;  %v492_v36 = vadd.f32 %v872_v22, %v491_v26 }
  0xac   :  { %v443_v37 = vrot.slane %v864_v32, 4  ;;  %v268_v39 = vadd.f32 %v856_v12, %v267_v24  ;;  %v220_v40 = vadd.f32 %v848_v13, %v219_v25  ;;  %v857_v41 = vsel %vm155_vm10, 1.0, %v985_v2 }
  0xad   :  { %vm147_vm11 = vcmp.eq.s32.totalorder %v77_v14, %v1073_v46  ;;  %v436_v42 = vadd.f32 %v435_v27, %v434_v7  ;;  %v265_v43 = vrot.slane %v264_v23, 1  ;;  %v217_v44 = vrot.slane %v216_v28, 1 }
  0xae   :  { %v360_v33 = vpop.permute.xlu1 %359  ;;  %v328_v38 = vpop.permute.xlu0 %327  ;;  %v440_v45 = vadd.f32 %v439_v29, %v438_v11  ;;  %v489_v47 = vrot.slane %v488_v31, 1  ;;  %v444_v48 = vadd.f32 %v864_v32, %v443_v37  ;;  %v273_v49 = vrot.slane %v857_v41, 4 }
  0xaf   :  { %v849_v50 = vsel %vm147_vm11, 1.0, %v985_v2  ;;  %v535_v51 = vpack.c.bf16 %v1127_v16, %v1127_v16  ;;  %v212_v52 = vadd.f32 %v211_v30, %v210_v17  ;;  %v1140_v53 = vadd.f32 %v484_v35, %v260_v34 }
  0xb0   :  { %v493_v54 = vrot.slane %v492_v36, 2  ;;  %v269_v55 = vrot.slane %v268_v39, 2  ;;  %v221_v56 = vrot.slane %v220_v40, 2  ;;  %v274_v57 = vadd.f32 %v857_v41, %v273_v49 }
  0xb1   :  { %v225_v58 = vrot.slane %v849_v50, 4  ;;  %v1142_v61 = vadd.f32 %v436_v42, %v212_v52  ;;  %v266_v62 = vadd.f32 %v265_v43, %v264_v23  ;;  %v218_v63 = vadd.f32 %v217_v44, %v216_v28 }
  0xb2   :  { %v140_v60 = vpop.permute.xlu1 %139  ;;  %vm379_vm12 = vcmp.eq.s32.totalorder %v360_v33, %v1073_v46  ;;  %v84_v0 = vpop.permute.xlu0 %83  ;;  %v490_v1 = vadd.f32 %v489_v47, %v488_v31  ;;  %v441_v3 = vrot.slane %v440_v45, 1  ;;  %v445_v4 = vrot.slane %v444_v48, 2 }
  0xb3   :  { %v226_v5 = vadd.f32 %v849_v50, %v225_v58  ;;  %v494_v7 = vadd.f32 %v493_v54, %v492_v36  ;;  %v873_v8 = vsel %vm379_vm12, 1.0, %v985_v2  ;;  %vm371_vm13 = vcmp.eq.s32.totalorder %v328_v38, %v1073_v46 }
  0xb4   :  { %vm156_vm14 = vcmp.eq.s32.totalorder %v140_v60, %v1073_v46  ;;  %v270_v9 = vadd.f32 %v269_v55, %v268_v39  ;;  %v222_v10 = vadd.f32 %v221_v56, %v220_v40  ;;  %v275_v11 = vrot.slane %v274_v57, 2 }
  0xb5   :  { %v497_v12 = vrot.slane %v873_v8, 4  ;;  %v227_v13 = vrot.slane %v226_v5, 2  ;;  %v865_v14 = vsel %vm371_vm13, 1.0, %v985_v2  ;;  %v858_v17 = vsel %vm156_vm14, 1.0, %v985_v2 }
  0xb6   :  { %vm148_vm15 = vcmp.eq.s32.totalorder %v84_v0, %v1073_v46  ;;  %v1151_v18 = vadd.f32 %v490_v1, %v266_v62  ;;  %v442_v20 = vadd.f32 %v441_v3, %v440_v45  ;;  %v446_v21 = vadd.f32 %v445_v4, %v444_v48  ;;  %v364_v27 = vpop.permute.xlu1 %363  ;;  %v332_v28 = vpop.permute.xlu0 %331 }
  0xb7   :  { %v498_v22 = vadd.f32 %v873_v8, %v497_v12  ;;  %v495_v23 = vrot.slane %v494_v7, 1  ;;  %v449_v24 = vrot.slane %v865_v14, 4  ;;  %v279_v25 = vrot.slane %v858_v17, 4 }
  0xb8   :  { %v850_v26 = vsel %vm148_vm15, 1.0, %v985_v2  ;;  %v271_v29 = vrot.slane %v270_v9, 1  ;;  %v223_v30 = vrot.slane %v222_v10, 1  ;;  %v276_v31 = vadd.f32 %v275_v11, %v274_v57 }
  0xb9   :  { %v499_v32 = vrot.slane %v498_v22, 2  ;;  %v228_v33 = vadd.f32 %v227_v13, %v226_v5  ;;  %v450_v34 = vadd.f32 %v865_v14, %v449_v24  ;;  %v280_v35 = vadd.f32 %v858_v17, %v279_v25 }
  0xba   :  { %v231_v36 = vrot.slane %v850_v26, 4  ;;  %v447_v37 = vrot.slane %v446_v21, 1  ;;  %vm380_vm0 = vcmp.eq.s32.totalorder %v364_v27, %v1073_v46  ;;  %vm372_vm1 = vcmp.eq.s32.totalorder %v332_v28, %v1073_v46 }
  0xbb   :  { %v500_v38 = vadd.f32 %v499_v32, %v498_v22  ;;  %v496_v39 = vadd.f32 %v495_v23, %v494_v7  ;;  %v451_v40 = vrot.slane %v450_v34, 2  ;;  %v281_v41 = vrot.slane %v280_v35, 2 }
  0xbc   :  { %v232_v42 = vadd.f32 %v850_v26, %v231_v36  ;;  %v277_v43 = vrot.slane %v276_v31, 1  ;;  %v874_v45 = vsel %vm380_vm0, 1.0, %v985_v2  ;;  %v866_v47 = vsel %vm372_vm1, 1.0, %v985_v2 }
  0xbd   :  { %v501_v44 = vrot.slane %v500_v38, 1  ;;  %v229_v48 = vrot.slane %v228_v33, 1  ;;  %v452_v49 = vadd.f32 %v451_v40, %v450_v34  ;;  %v503_v52 = vrot.slane %v874_v45, 4 }
  0xbe   :  { %v233_v50 = vrot.slane %v232_v42, 2  ;;  %v513_v54 = vadd.f32 %v442_v20, %v218_v63  ;;  %v448_v55 = vadd.f32 %v447_v37, %v446_v21  ;;  %v455_v57 = vrot.slane %v866_v47, 4 }
  0xbf   :  { %v502_v56 = vadd.f32 %v501_v44, %v500_v38  ;;  %vm591_vm2 = vcmask 1042434   ;;  %v272_v46 = vadd.f32 %v271_v29, %v270_v9  ;;  %v453_v58 = vrot.slane %v452_v49, 1 }
  0xc0   :  { %v282_v60 = vadd.f32 %v281_v41, %v280_v35  ;;  %v504_v62 = vadd.f32 %v874_v45, %v503_v52  ;;  %v224_v0 = vadd.f32 %v223_v30, %v222_v10  ;;  %v278_v1 = vadd.f32 %v277_v43, %v276_v31 }
  0xc1   :  { %v234_v3 = vadd.f32 %v233_v50, %v232_v42  ;;  %v456_v4 = vadd.f32 %v866_v47, %v455_v57  ;;  %vm593_vm4 = vcmask 1043459   ;;  %v522_v5 = vadd.f32 %v496_v39, %v272_v46 }
  0xc2   :  { %v230_v2 = vadd.f32 %v229_v48, %v228_v33  ;;  %v454_v7 = vadd.f32 %v453_v58, %v452_v49  ;;  %v505_v8 = vrot.slane %v504_v62, 2  ;;  %vm595_vm5 = vcmask 1044484   ;;  %v732_v58 = vld [vmem:[%s1217_s4] sm:$0xff] }
  0xc3   :  { %v527_v63 = vpack.c.bf16 %v1129_v19, %v1129_v19  ;;  %v514_v11 = vadd.f32 %v448_v55, %v224_v0  ;;  %v523_v12 = vadd.f32 %v502_v56, %v278_v1  ;;  %v457_v13 = vrot.slane %v456_v4, 2  ;;  %v734_v0 = vld [vmem:[%s1217_s4 + $0x10] sm:$0xff]  ;;  %v735_v1 = vld [vmem:[%s1217_s4 + $0x18] sm:$0xff] }
  0xc4   :  { %vm597_vm6 = vcmask 1045509   ;;  %v536_v9 = vpack.c.bf16 %v1140_v53, %v1140_v53  ;;  %v515_v10 = vadd.f32 %v454_v7, %v230_v2  ;;  %v283_v14 = vrot.slane %v282_v60, 1  ;;  %v883_v7 = vld [vmem:[%s1216_s3] ss:$0 sm:$0xff]  ;;  %s961_s3 = scalar_lea.vmem %s833_s29, 256 }
  0xc5   :  { %v506_v17 = vadd.f32 %v505_v8, %v504_v62  ;;  %vm599_vm7 = vcmask 1046534   ;;  %v528_v20 = vpack.c.bf16 %v1142_v61, %v1142_v61  ;;  %v537_v21 = vpack.c.bf16 %v1151_v18, %v1151_v18  ;;  %p962_p0 = scmp.ne.s32.totalorder %s833_s29, %s961_s3  ;;  %p967_p2 = scmp.lt.s32.totalorder %s961_s3, %s961_s3 }
  0xc6   :  { %v235_v22 = vrot.slane %v234_v3, 1  ;;  %v458_v23 = vadd.f32 %v457_v13, %v456_v4  ;;  %v583_v19 = vunpack.c.l.b16 %v535_v51  ;;  %v529_v24 = vpack.c.bf16 %v513_v54, %v513_v54 }
  0xc7   :  { %v538_v25 = vpack.c.bf16 %v522_v5, %v522_v5  ;;  %v507_v26 = vrot.slane %v506_v17, 1  ;;  %v575_v53 = vunpack.c.l.b16 %v527_v63  ;;  %v530_v27 = vpack.c.bf16 %v514_v11, %v514_v11  ;;  %v712_v4 = vpop.permute.xlu0 %711  ;;  %v717_v2 = vpop.permute.xlu1 %716  ;;  %p968_p3 = por %p967_p2, %p966_p1 }
  0xc8   :  { %v539_v28 = vpack.c.bf16 %v523_v12, %v523_v12  ;;  %v459_v29 = vrot.slane %v458_v23, 1  ;;  %v584_v30 = vunpack.c.l.b16 %v536_v9  ;;  %v531_v31 = vpack.c.bf16 %v515_v10, %v515_v10 }
  0xc9   :  { %v284_v32 = vadd.f32 %v283_v14, %v282_v60  ;;  %v508_v61 = vadd.f32 %v507_v26, %v506_v17  ;;  %v576_v33 = vunpack.c.l.b16 %v528_v20  ;;  %v585_v34 = vunpack.c.l.b16 %v537_v21  ;;  %v733_v60 = vld [vmem:[%s1217_s4 + $0x8] sm:$0xff]  ;;  %v884_v20 = vld [vmem:[%s1218_s5] ss:$0 sm:$0xff]  ;;  %p969_p4 = pnand %p968_p3, %p962_p0 }
  0xca   :  { %v236_v18 = vadd.f32 %v235_v22, %v234_v3  ;;  %v460_v35 = vadd.f32 %v459_v29, %v458_v23  ;;  %v603_v16 = vsel %vm589_vm3, %v1120_v6, %v1125_v15  ;;  %v577_v51 = vunpack.c.l.b16 %v529_v24 }
  0xcb   :  { %v586_v36 = vunpack.c.l.b16 %v538_v25  ;;  %v524_v37 = vadd.f32 %v508_v61, %v284_v32  ;;  %v604_v38 = vsel %vm591_vm2, %v583_v19, %v603_v16  ;;  %v578_v39 = vunpack.c.l.b16 %v530_v27 }
  0xcc   :  { %v587_v40 = vunpack.c.l.b16 %v539_v28  ;;  %v516_v41 = vadd.f32 %v460_v35, %v236_v18  ;;  %v592_v42 = vsel %vm591_vm2, %v575_v53, %v1115_v59  ;;  %v579_v43 = vunpack.c.l.b16 %v531_v31 }
  0xcd   :  { %v540_v44 = vpack.c.bf16 %v524_v37, %v524_v37  ;;  %v605_v45 = vsel %vm593_vm4, %v584_v30, %v604_v38  ;;  %v594_v48 = vsel %vm593_vm4, %v576_v33, %v592_v42  ;;  %vm601_vm8 = vcmask 1047559  }
  0xce   :  { %v532_v47 = vpack.c.bf16 %v516_v41, %v516_v41  ;;  %v606_v6 = vsel %vm595_vm5, %v585_v34, %v605_v45  ;;  %v596_v49 = vsel %vm595_vm5, %v577_v51, %v594_v48  ;;  %v933_v62 = vpack.c.bf16 %v733_v60, %v732_v58 }
  0xcf   :  { %v588_v15 = vunpack.c.l.b16 %v540_v44  ;;  %v607_v50 = vsel %vm597_vm6, %v586_v36, %v606_v6  ;;  %v598_v54 = vsel %vm597_vm6, %v578_v39, %v596_v49  ;;  %v937_v3 = vpack.c.bf16 %v735_v1, %v734_v0 }
  0xd0   :  { %v580_v52 = vunpack.c.l.b16 %v532_v47  ;;  %v608_v59 = vsel %vm599_vm7, %v587_v40, %v607_v50  ;;  %v600_v55 = vsel %vm599_vm7, %v579_v43, %v598_v54  ;;  %934 = vmatprep.subr.bf16.mxu1 %v933_v62  ;;  %vm743_vm3 = vcmask 261120  }
  0xd1   :  { %v609_v56 = vsel %vm601_vm8, %v588_v15, %v608_v59  ;;  %936 = vmatpush3.bf16.msra.mxu1 %v933_v62 }
  0xd2   :  { %v602_v57 = vsel %vm601_vm8, %v580_v52, %v600_v55  ;;  %938 = vmatprep.subr.bf16.mxu1 %v937_v3 }
  0xd3   :  { %v610_v46 = vpack.c.b16 %v609_v56, %v602_v57 }
  0xd5   :  { %919 = vmatmul.mubr.bf16.vlgmr.msra.gmra.mrb[0].mxu0 %v610_v46  ;;  %940 = vmatpush3.bf16.msra.mxu1 %v937_v3 }
 0x1a8   :  { %v694_v5 = vpop.f32.mrb[0].mxu0 }
 0x1a9   :  { %v719_v8 = vmul.f32 %v712_v4, %v694_v5  ;;  %v920_v63 = vpop.f32.mrb[1].mxu0 }
 0x1aa   :  { %v697_v11 = vpop.f32.mrb[2].mxu0 }
 0x1ab   :  { %v720_v12 = vmul.f32 %v717_v2, %v697_v11  ;;  %v921_v13 = vpop.f32.mrb[3].mxu0  ;;  %v728_v9 = vadd.f32 %v883_v7, %v719_v8 }
 0x1ad   :  { %v729_v10 = vadd.f32 %v883_v7, %v720_v12  ;;  %v730_v14 = vmax.f32 %v728_v9, 0.0 }
 0x1af   :  { %v731_v17 = vmax.f32 %v729_v10, 0.0  ;;  %930 = vmatprep.mubr.msk.f32.mxu1 %vm743_vm3, %v730_v14 }
 0x1b1   :  { %931 = vmatmul.mubr.msk.f32.vlgmr.msra.gmra.mrb[0].mxu1 %vm743_vm3, %v731_v17 }
 0x284   :  { %v932_v21 = vpop.f32.mrb[0].mxu1 }
 0x285   :  { %v822_v22 = vadd.f32 %v932_v21, %v884_v20  ;;  %v816_v23 = vpop.f32.mrb[1].mxu1 }
 0x286   :  { %v817_v19 = vadd.f32 %v884_v20, %v816_v23 }
 0x287   :  { %826 = vst [vmem:[#allocation2 + $0x8] sm:$0xff] %v822_v22 }
 0x288   :  { %825 = vst [vmem:[#allocation2] sm:$0xff] %v817_v19 }
 0x289   :  { %972 = shalt.err (!%p969_p4)
}
 0x28a   :  { %s973_s5 = scalar_lea.hbm %s1219_s6, 256 }
 0x28b   :  { %p974_p5 = scmp.ne.s32.totalorder %s1219_s6, %s973_s5  ;;  %p977_p6 = scmp.lt.u32.totalorder %s973_s5, %s1219_s6 }
 0x28d   :  { %p979_p7 = pnand %p977_p6, %p974_p5 }
 0x28f   :  { %982 = shalt.err (!%p979_p7)
}
 0x290   :  { %s989_s12 = smov 128   ;;  %s990_s13 = smov 8  }
 0x291   :  { %838 = dma.vmem_to_hbm [thread:$0]  %s833_s29, 256, %s1219_s6, [#allocation3], %s989_s12, %s989_s12, %s990_s13  }
 0x292   :  { %983 = dma.done.wait [#allocation3], 256  }
 0x293   :  { %984 = vsyncadd [#allocation3], 4294967040 }
 0x294   :  { %842 = vsyncpa [#allocation3], 1 }

</bundles_post_ra>
